<compile_context>
chip_gen: v7x
topology: tpu7x:2x2x1
jax: 0.10.0
libtpu: 0.0.40
codegen_flags: <defaults>
</compile_context>

<pallas_src>
import functools

import jax
import jax.numpy as jnp
import numpy as np
from jax import lax
from jax.experimental import pallas as pl
from jax.experimental.pallas import tpu as pltpu


# ---------------------------------------------------------------------------
# Kernel
# ---------------------------------------------------------------------------
def cbam_kernel(H, W, K, use_band, x_ref, w1t_ref, w2t_ref, wsp_ref, out_ref):
    """CBAM forward for a block of B images.

    x_ref  : (B, C, H*W) model-dtype VMEM (channels on sublanes, flat spatial on lanes)
    w1t_ref: (C, Hd)     f32 VMEM (transposed 1st 1x1 conv of the shared MLP)
    w2t_ref: (Hd, C)     f32 VMEM (transposed 2nd 1x1 conv of the shared MLP)
    wsp_ref: use_band  -> (2*H*W, H*W) f32 VMEM banded matrix encoding the 7x7 conv
             otherwise -> (2*K*K,)     f32 SMEM raw taps [avg taps | max taps]
    out_ref: (B, C, H*W) model-dtype VMEM
    """
    B, C, HW = x_ref.shape
    P = K // 2

    x = x_ref[...].astype(jnp.float32)                 # upcast once; math in f32

    # ---------------- channel attention ----------------
    avg = jnp.mean(x, axis=2)                          # (B, C)  AdaptiveAvgPool2d(1)
    mx = jnp.max(x, axis=2)                            # (B, C)  AdaptiveMaxPool2d(1)
    # TODO(synk): the HW-axis mean could also run on the MXU (x.reshape(B*C,HW) @ ones);
    # kept as a lane reduction because the (B*C,1)->(B,C) relayout is not guaranteed
    # to lower cleanly on all Mosaic versions.

    def mlp(v):                                        # shared 1x1-conv MLP, tiny matmuls
        h = jnp.maximum(
            jnp.dot(v, w1t_ref[...], preferred_element_type=jnp.float32), 0.0)
        return jnp.dot(h, w2t_ref[...], preferred_element_type=jnp.float32)

    ca = jax.nn.sigmoid(mlp(avg) + mlp(mx))            # (B, C)

    # -------- spatial attention (ca fused into reductions; no out1 temp kept) --------
    xc = x * ca[:, :, None]                            # transient (B, C, HW)
    s_avg = jnp.mean(xc, axis=1)                       # (B, HW) channel mean
    s_max = jnp.max(xc, axis=1)                        # (B, HW) channel max

    if use_band:
        # One MXU matmul replaces 49 lane-shifted slices + masks on the VPU/XLU.
        s2 = jnp.concatenate([s_avg, s_max], axis=1)   # (B, 2*HW)
        acc = jnp.dot(s2, wsp_ref[...], preferred_element_type=jnp.float32)  # (B, HW)
    else:
        # Fallback tap loop for large images (banded matrix would be too big).
        PADL = P * W + P
        zpad = jnp.zeros((B, PADL), jnp.float32)
        pa = jnp.concatenate([zpad, s_avg, zpad], axis=1)   # separate avg / max buffers:
        pm = jnp.concatenate([zpad, s_max, zpad], axis=1)   # no non-8-aligned sublane slicing
        col = lax.broadcasted_iota(jnp.int32, (1, HW), 1) % W
        accs = [jnp.zeros((B, HW), jnp.float32), jnp.zeros((B, HW), jnp.float32)]
        for kj in range(K):                                 # kj outer: mask applied once per kj
            dj = kj - P
            mask = jnp.logical_and(col + dj >= 0, col + dj < W).astype(jnp.float32)
            part = jnp.zeros((B, HW), jnp.float32)
            for ki in range(K):
                start = ki * W + kj
                part = part + (wsp_ref[ki * K + kj] * pa[:, start:start + HW]
                               + wsp_ref[K * K + ki * K + kj] * pm[:, start:start + HW])
            accs[kj % 2] = accs[kj % 2] + part * mask       # 2 partial accumulator chains
        acc = accs[0] + accs[1]

    sa = jax.nn.sigmoid(acc)                           # (B, HW)
    # Recompute x*ca instead of reusing xc so its live range can end above.
    out_ref[...] = (x * ca[:, :, None] * sa[:, None, :]).astype(out_ref.dtype)


# ---------------------------------------------------------------------------
# Host-side helpers
# ---------------------------------------------------------------------------
def _build_spatial_band(wsp, H, W):
    """(2, K, K) conv taps -> (2*H*W, H*W) banded matrix (Conv2d cross-correlation,
    zero padding at image borders). Rows [0,HW) = avg channel, [HW,2HW) = max channel."""
    w = np.asarray(wsp, np.float32)
    K = w.shape[-1]
    P = K // 2
    HW = H * W
    band = np.zeros((2 * HW, HW), np.float32)
    qi = np.arange(H)[:, None]
    qj = np.arange(W)[None, :]
    q = qi * W + qj                                     # output pixel index (H, W)
    for c in range(2):
        for ki in range(K):
            for kj in range(K):
                ii = qi + ki - P
                jj = qj + kj - P
                valid = (ii >= 0) & (ii < H) & (jj >= 0) & (jj < W)
                p = ii * W + jj                          # input pixel index
                band[c * HW + p[valid], q[valid]] += w[c, ki, kj]
    return jnp.asarray(band)


def _vmem_limit_bytes():
    """Generation-aware scoped-VMEM limit (v5e/v6e: 128 MiB, v7x: 64 MiB per TC)."""
    try:
        cap = int(pltpu.get_tpu_info().vmem_capacity_bytes)
    except Exception:
        cap = 0
    if cap <= 0:
        cap = 64 * 1024 * 1024          # conservative fallback (v7x per-TC VMEM)
    return int(min(cap * 3 // 4, 64 * 1024 * 1024))


def _choose_block_batch(n, c, hw, itemsize, budget_bytes, fixed_bytes):
    """Pick block batch B so that double-buffered in/out blocks plus ~4 f32-sized
    temps fit `budget_bytes`, the compute block stays <= ~8 MiB, and the grid has
    >= 2 steps (keeps both v7x TensorCores busy and the DMA pipeline alive)."""
    per_img = c * hw * (2 * itemsize + 2 * itemsize + 4 * 4)
    by_vmem = (budget_bytes - fixed_bytes) // max(per_img, 1)
    by_blk = (8 * 1024 * 1024) // max(c * hw * 4, 1)
    bmax = int(max(1, min(by_vmem, by_blk, max(1, (n + 1) // 2))))
    best_div = 1
    for b in range(1, bmax + 1):        # largest exact divisor of n within the cap
        if n % b == 0:
            best_div = b
    if 2 * best_div >= bmax:            # good divisor -> no batch padding needed
        return best_div
    return bmax                         # otherwise pad N up to a multiple of bmax


# ---------------------------------------------------------------------------
# Wrapper
# ---------------------------------------------------------------------------
def cbam_pallas(x, w1, w2, wsp):
    """CBAM forward. x: (N, C, H, W); w1: (Hd, C); w2: (C, Hd); wsp: (2, K, K)."""
    N, C, H, W = x.shape
    Hd = w1.shape[0]
    K = wsp.shape[-1]
    HW = H * W
    dtype = x.dtype
    itemsize = jnp.dtype(dtype).itemsize

    # Spatial conv as one MXU matmul while the banded weight stays small (<= 8 MiB);
    # otherwise fall back to the in-kernel tap loop.
    use_band = (2 * HW * HW * 4) <= (8 * 1024 * 1024)

    vmem_limit = _vmem_limit_bytes()
    fixed = ((2 * (2 * HW * HW * 4)) if use_band else 4096) \
        + 2 * 2 * C * Hd * 4 + (1 << 20)
    B = _choose_block_batch(N, C, HW, itemsize, vmem_limit // 2, fixed)

    Npad = pl.cdiv(N, B) * B
    x2 = x.reshape(N, C, HW)            # keep model dtype: halves HBM traffic for bf16
    if Npad != N:                       # pad awkward batch sizes; sliced off below
        x2 = jnp.pad(x2, ((0, Npad - N), (0, 0), (0, 0)))

    w1t = jnp.asarray(w1, jnp.float32).T                # (C, Hd)
    w2t = jnp.asarray(w2, jnp.float32).T                # (Hd, C)
    if use_band:
        wsp_in = _build_spatial_band(wsp, H, W)         # (2*HW, HW) f32, grid-resident
        wsp_spec = pl.BlockSpec((2 * HW, HW), lambda n: (0, 0))
    else:
        wsp_in = jnp.asarray(wsp, jnp.float32).reshape(2 * K * K)
        wsp_spec = pl.BlockSpec(memory_space=pltpu.MemorySpace.SMEM)

    kernel = functools.partial(cbam_kernel, H, W, K, use_band)

    out = pl.pallas_call(
        kernel,
        out_shape=jax.ShapeDtypeStruct((Npad, C, HW), dtype),
        grid_spec=pltpu.PrefetchScalarGridSpec(
            num_scalar_prefetch=0,
            grid=(Npad // B,),
            in_specs=[
                pl.BlockSpec((B, C, HW), lambda n: (n, 0, 0)),
                pl.BlockSpec((C, Hd), lambda n: (0, 0)),
                pl.BlockSpec((Hd, C), lambda n: (0, 0)),
                wsp_spec,
            ],
            out_specs=pl.BlockSpec((B, C, HW), lambda n: (n, 0, 0)),
        ),
        compiler_params=pltpu.CompilerParams(
            dimension_semantics=("parallel",),
            vmem_limit_bytes=int(vmem_limit)),
    )(x2, w1t, w2t, wsp_in)

    return out[:N].reshape(N, C, H, W)


# ---------------------------------------------------------------------------
# Pure-JAX reference (matches the PyTorch CBAM forward)
# ---------------------------------------------------------------------------
def cbam_reference(x, w1, w2, wsp):
    avg = jnp.mean(x, axis=(2, 3))                       # (N, C)
    mx = jnp.max(x, axis=(2, 3))                         # (N, C)

    def mlp(v):
        return jnp.maximum(v @ w1.T, 0.0) @ w2.T

    ca = jax.nn.sigmoid(mlp(avg) + mlp(mx))              # (N, C)
    out1 = x * ca[:, :, None, None]

    s_avg = jnp.mean(out1, axis=1, keepdims=True)
    s_max = jnp.max(out1, axis=1, keepdims=True)
    s = jnp.concatenate([s_avg, s_max], axis=1)          # (N, 2, H, W)
    K = wsp.shape[-1]
    P = K // 2
    conv = lax.conv_general_dilated(
        s, wsp[None], window_strides=(1, 1), padding=((P, P), (P, P)),
        dimension_numbers=("NCHW", "OIHW", "NCHW"))
    sa = jax.nn.sigmoid(conv)
    return out1 * sa


if __name__ == "__main__":
    # Small, CBAM-consistent shapes: channels must be divisible by ratio=16.
    N, C, H, W = 2, 32, 16, 16
    ratio, K = 16, 7
    Hd = C // ratio

    key = jax.random.PRNGKey(0)
    kx, k1, k2, k3 = jax.random.split(key, 4)
    x = jax.random.normal(kx, (N, C, H, W), dtype=jnp.float32)
    w1 = jax.random.normal(k1, (Hd, C), dtype=jnp.float32) * 0.3     # 1x1 conv #1
    w2 = jax.random.normal(k2, (C, Hd), dtype=jnp.float32) * 0.3     # 1x1 conv #2
    wsp = jax.random.normal(k3, (2, K, K), dtype=jnp.float32) * 0.1  # 7x7 conv

    out = jax.block_until_ready(cbam_pallas(x, w1, w2, wsp))
    ref = jax.block_until_ready(cbam_reference(x, w1, w2, wsp))
    np.testing.assert_allclose(np.asarray(out), np.asarray(ref),
                               rtol=1e-4, atol=1e-4)

    # bf16 I/O smoke test (model-dtype DMA path; f32 math inside the kernel).
    xb = x.astype(jnp.bfloat16)
    outb = jax.block_until_ready(cbam_pallas(xb, w1, w2, wsp))
    assert outb.dtype == jnp.bfloat16
    refb = cbam_reference(xb.astype(jnp.float32), w1, w2, wsp)
    np.testing.assert_allclose(np.asarray(outb.astype(jnp.float32)),
                               np.asarray(refb), rtol=1e-1, atol=1e-1)

    print("KERNEL_OK")
</pallas_src>

<mosaic_0001>
module attributes {stable_mosaic.version = 11 : i64} {
  func.func @cbam_kernel(%arg0: i32, %arg1: memref<1x32x256xf32, #tpu.memory_space<vmem>>, %arg2: memref<32x2xf32, #tpu.memory_space<vmem>>, %arg3: memref<2x32xf32, #tpu.memory_space<vmem>>, %arg4: memref<512x256xf32, #tpu.memory_space<vmem>>, %arg5: memref<1x32x256xf32, #tpu.memory_space<vmem>>) attributes {dimension_semantics = [#tpu.dimension_semantics<parallel>], iteration_bounds = array<i64: 2>, scalar_prefetch = 0 : i64, scratch_operands = 0 : i64, tpu.core_type = #tpu.core_type<tc>, window_params = [{transform_indices = @transform_0, window_bounds = array<i64: 1, 32, 256>}, {pipeline_mode = #tpu.pipeline_mode<synchronous>, transform_indices = @transform_1, window_bounds = array<i64: 32, 2>}, {pipeline_mode = #tpu.pipeline_mode<synchronous>, transform_indices = @transform_2, window_bounds = array<i64: 2, 32>}, {pipeline_mode = #tpu.pipeline_mode<synchronous>, transform_indices = @transform_3, window_bounds = array<i64: 512, 256>}, {transform_indices = @transform_4, window_bounds = array<i64: 1, 32, 256>}]} {
    %c0 = arith.constant 0 : index
    %c0_0 = arith.constant 0 : index
    %c0_1 = arith.constant 0 : index
    %0 = vector.load %arg1[%c0, %c0_0, %c0_1] : memref<1x32x256xf32, #tpu.memory_space<vmem>>, vector<1x32x256xf32>
    %cst = arith.constant dense<0.000000e+00> : vector<1x32xf32>
    %1 = vector.multi_reduction <add>, %0, %cst [2] : vector<1x32x256xf32> to vector<1x32xf32>
    %cst_2 = arith.constant 2.560000e+02 : f32
    %2 = vector.broadcast %cst_2 : f32 to vector<1x32xf32>
    %3 = arith.divf %1, %2 : vector<1x32xf32>
    %cst_3 = arith.constant dense<0xFF800000> : vector<1x32xf32>
    %4 = vector.multi_reduction <maximumf>, %0, %cst_3 [2] : vector<1x32x256xf32> to vector<1x32xf32>
    %c0_4 = arith.constant 0 : index
    %c0_5 = arith.constant 0 : index
    %5 = vector.load %arg2[%c0_4, %c0_5] : memref<32x2xf32, #tpu.memory_space<vmem>>, vector<32x2xf32>
    %cst_6 = arith.constant dense<0.000000e+00> : vector<1x2xf32>
    %6 = tpu.matmul %3, %5, %cst_6 {dimension_numbers = #tpu.dot_dimension_numbers<[1], [0], [0], [1], [0, 0, 1, 1], [], []>} : vector<1x32xf32>, vector<32x2xf32>, vector<1x2xf32> -> vector<1x2xf32>
    %cst_7 = arith.constant 0.000000e+00 : f32
    %7 = vector.broadcast %cst_7 : f32 to vector<1x2xf32>
    %8 = arith.maximumf %6, %7 : vector<1x2xf32>
    %c0_8 = arith.constant 0 : index
    %c0_9 = arith.constant 0 : index
    %9 = vector.load %arg3[%c0_8, %c0_9] : memref<2x32xf32, #tpu.memory_space<vmem>>, vector<2x32xf32>
    %cst_10 = arith.constant dense<0.000000e+00> : vector<1x32xf32>
    %10 = tpu.matmul %8, %9, %cst_10 {dimension_numbers = #tpu.dot_dimension_numbers<[1], [0], [0], [1], [0, 0, 1, 1], [], []>} : vector<1x2xf32>, vector<2x32xf32>, vector<1x32xf32> -> vector<1x32xf32>
    %c0_11 = arith.constant 0 : index
    %c0_12 = arith.constant 0 : index
    %11 = vector.load %arg2[%c0_11, %c0_12] : memref<32x2xf32, #tpu.memory_space<vmem>>, vector<32x2xf32>
    %cst_13 = arith.constant dense<0.000000e+00> : vector<1x2xf32>
    %12 = tpu.matmul %4, %11, %cst_13 {dimension_numbers = #tpu.dot_dimension_numbers<[1], [0], [0], [1], [0, 0, 1, 1], [], []>} : vector<1x32xf32>, vector<32x2xf32>, vector<1x2xf32> -> vector<1x2xf32>
    %cst_14 = arith.constant 0.000000e+00 : f32
    %13 = vector.broadcast %cst_14 : f32 to vector<1x2xf32>
    %14 = arith.maximumf %12, %13 : vector<1x2xf32>
    %c0_15 = arith.constant 0 : index
    %c0_16 = arith.constant 0 : index
    %15 = vector.load %arg3[%c0_15, %c0_16] : memref<2x32xf32, #tpu.memory_space<vmem>>, vector<2x32xf32>
    %cst_17 = arith.constant dense<0.000000e+00> : vector<1x32xf32>
    %16 = tpu.matmul %14, %15, %cst_17 {dimension_numbers = #tpu.dot_dimension_numbers<[1], [0], [0], [1], [0, 0, 1, 1], [], []>} : vector<1x2xf32>, vector<2x32xf32>, vector<1x32xf32> -> vector<1x32xf32>
    %17 = arith.addf %10, %16 : vector<1x32xf32>
    %18 = arith.negf %17 : vector<1x32xf32>
    %19 = math.exp %18 : vector<1x32xf32>
    %cst_18 = arith.constant 1.000000e+00 : f32
    %20 = vector.broadcast %cst_18 : f32 to vector<1x32xf32>
    %21 = arith.addf %20, %19 : vector<1x32xf32>
    %22 = arith.divf %20, %21 : vector<1x32xf32>
    %23 = vector.shape_cast %22 : vector<1x32xf32> to vector<1x32x1xf32>
    %24 = vector.broadcast %23 : vector<1x32x1xf32> to vector<1x32x256xf32>
    %25 = arith.mulf %0, %24 : vector<1x32x256xf32>
    %cst_19 = arith.constant dense<0.000000e+00> : vector<1x256xf32>
    %26 = vector.multi_reduction <add>, %25, %cst_19 [1] : vector<1x32x256xf32> to vector<1x256xf32>
    %cst_20 = arith.constant 3.200000e+01 : f32
    %27 = vector.broadcast %cst_20 : f32 to vector<1x256xf32>
    %28 = arith.divf %26, %27 : vector<1x256xf32>
    %cst_21 = arith.constant dense<0xFF800000> : vector<1x256xf32>
    %29 = vector.multi_reduction <maximumf>, %25, %cst_21 [1] : vector<1x32x256xf32> to vector<1x256xf32>
    %30 = tpu.concatenate %28, %29 in 1 : vector<1x256xf32>, vector<1x256xf32> -> vector<1x512xf32>
    %c0_22 = arith.constant 0 : index
    %c0_23 = arith.constant 0 : index
    %31 = vector.load %arg4[%c0_22, %c0_23] : memref<512x256xf32, #tpu.memory_space<vmem>>, vector<512x256xf32>
    %cst_24 = arith.constant dense<0.000000e+00> : vector<1x256xf32>
    %32 = tpu.matmul %30, %31, %cst_24 {dimension_numbers = #tpu.dot_dimension_numbers<[1], [0], [0], [1], [0, 0, 1, 1], [], []>} : vector<1x512xf32>, vector<512x256xf32>, vector<1x256xf32> -> vector<1x256xf32>
    %33 = arith.negf %32 : vector<1x256xf32>
    %34 = math.exp %33 : vector<1x256xf32>
    %cst_25 = arith.constant 1.000000e+00 : f32
    %35 = vector.broadcast %cst_25 : f32 to vector<1x256xf32>
    %36 = arith.addf %35, %34 : vector<1x256xf32>
    %37 = arith.divf %35, %36 : vector<1x256xf32>
    %38 = vector.shape_cast %22 : vector<1x32xf32> to vector<1x32x1xf32>
    %39 = vector.broadcast %38 : vector<1x32x1xf32> to vector<1x32x256xf32>
    %40 = arith.mulf %0, %39 : vector<1x32x256xf32>
    %41 = vector.shape_cast %37 : vector<1x256xf32> to vector<1x1x256xf32>
    %42 = vector.broadcast %41 : vector<1x1x256xf32> to vector<1x32x256xf32>
    %43 = arith.mulf %40, %42 : vector<1x32x256xf32>
    %c0_26 = arith.constant 0 : index
    %c0_27 = arith.constant 0 : index
    %c0_28 = arith.constant 0 : index
    %44 = vector.load %arg5[%c0_26, %c0_27, %c0_28] : memref<1x32x256xf32, #tpu.memory_space<vmem>>, vector<1x32x256xf32>
    tpu.vector_store %arg5[%c0_26, %c0_27, %c0_28], %43 {strides = array<i32>} : memref<1x32x256xf32, #tpu.memory_space<vmem>>, vector<1x32x256xf32>,
    return
  }
  func.func @transform_0(%arg0: i32) -> (i32, i32, i32) {
    %c0_i32 = arith.constant 0 : i32
    %c0_i32_0 = arith.constant 0 : i32
    %c0_i32_1 = arith.constant 0 : i32
    return %arg0, %c0_i32, %c0_i32_0 : i32, i32, i32
  }
  func.func @transform_1(%arg0: i32) -> (i32, i32) {
    %c0_i32 = arith.constant 0 : i32
    %c0_i32_0 = arith.constant 0 : i32
    %c0_i32_1 = arith.constant 0 : i32
    return %c0_i32, %c0_i32_0 : i32, i32
  }
  func.func @transform_2(%arg0: i32) -> (i32, i32) {
    %c0_i32 = arith.constant 0 : i32
    %c0_i32_0 = arith.constant 0 : i32
    %c0_i32_1 = arith.constant 0 : i32
    return %c0_i32, %c0_i32_0 : i32, i32
  }
  func.func @transform_3(%arg0: i32) -> (i32, i32) {
    %c0_i32 = arith.constant 0 : i32
    %c0_i32_0 = arith.constant 0 : i32
    %c0_i32_1 = arith.constant 0 : i32
    return %c0_i32, %c0_i32_0 : i32, i32
  }
  func.func @transform_4(%arg0: i32) -> (i32, i32, i32) {
    %c0_i32 = arith.constant 0 : i32
    %c0_i32_0 = arith.constant 0 : i32
    %c0_i32_1 = arith.constant 0 : i32
    return %arg0, %c0_i32, %c0_i32_0 : i32, i32, i32
  }
}

</mosaic_0001>

<bundles_post_ra>
// kernel: tpu_custom_call.1
= control target key start
LH: loop header
LB: loop body
LE: loop exit
PB: predicated region body
PF: predicated region fallthrough
CT: control target
= control target key end

     0   :  { %9 = vsyncpa [#allocation3], 0  ;;  %s1883_s0 = inlined_call_operand.hbm [shape: f32[2,32,256], index: 0, kind: input, shape index: {}]   ;;  %s1884_s1 = inlined_call_operand.vmem [shape: f32[32,2], index: 1, kind: input, shape index: {}]   ;;  %s1885_s2 = inlined_call_operand.vmem [shape: f32[2,32], index: 2, kind: input, shape index: {}]   ;;  %s1886_s3 = inlined_call_operand.hbm [shape: f32[512,256], index: 3, kind: input, shape index: {}]   ;;  %s1887_s4 = inlined_call_operand.hbm [shape: f32[2,32,256], index: 4, kind: output, shape index: {}]  }
   0x1   :  { %11 = vsyncpa [#allocation3 + $0x1], 0 }
   0x2   :  { %12 = vsyncpa [#allocation6], 0 }
   0x3   :  { %13 = vsyncpa [#allocation4], 0 }
   0x4   :  { %15 = vsyncpa [#allocation4 + $0x1], 0  ;;  %s1557_s15 = smov 0   ;;  %s1559_s16 = smov 0  }
   0x5   :  { %s1561_s17 = smov 0   ;;  %s1563_s18 = smov 0  }
   0x6 LB: > { %s1578_s19 = sadd.s32 4294967295, %s1520_s18   ;;  %s1100_s20 = sadd.s32 4294967294, %s1520_s18   ;;  %s1520_s18 = sphi %s1563_s18, %s1907_s18   ;;  %s1516_s17 = sphi %s1561_s17, %s1906_s17   ;;  %s1512_s16 = sphi %s1559_s16, %s1905_s16   ;;  %s1508_s15 = sphi %s1557_s15, %s1904_s15  }
   0x7   : > { %p41_p0 = scmp.ne.s32.totalorder %s1512_s16, %s1508_s15  ;;  %p1888_p1 = scmp.eq.s32.totalorder %s1578_s19, 0 }
   0x8   : > { %p134_p3 = scmp.eq.s32.totalorder %s1100_s20, 1  ;;  %p1101_p5 = scmp.ge.s32.totalorder %s1520_s18, 1 }
   0x9   : > { %p1587_p4 = por %p1888_p1, %p41_p0  ;;  %p141_p7 = scmp.lt.s32.totalorder %s1520_s18, 3 }
   0xa   : > { %p1592_p6 = por %p134_p3, %p41_p0  ;;  %s1522_s24 = smov [#allocation5]  }
   0xb   : > { %s1891_s21 = scalar_select %p1587_p4, 1, 0 }
   0xc   : > { %s1892_s22 = scalar_select %p1592_p6, 1, 0 }
   0xd   : > { %p1597_p8 = pnand %p1101_p5, %p141_p7  ;;  %s159_s25 = sshll.u32 %s1522_s24, 4  ;;  %s1601_s25 = int_to_ptr.vmem [resolvable:$true] %s159_s25 }
   0xe   : > { %s1613_s27 = sadd.s32 1, %s1520_s18   ;;  %s28_s28 = sadd.s32 1, %s1516_s17 }
   0xf   : > { %s1893_s23 = scalar_select %p1597_p8, 1, 0 }
  0x10   : > { %p1324_p9 = pneg %p1597_p8  ;;  %s25_s29 = ssub.s32 %s1520_s18, %s1613_s27 }
  0x11   : > { %s1392_s6 = scalar_lea.hbm %s1886_s3, 16384 }
  0x12   : > { %p1608_p11 = pnand %p1324_p9, %p1888_p1  ;;  %p1393_p12 = scmp.ne.s32.totalorder %s1886_s3, %s1392_s6 }
  0x13   : > { %p1399_p5 = scmp.lt.u32.totalorder %s1392_s6, %s1886_s3 }
  0x14   : > { %p1394_p13 = pneg %p1608_p11 }
  0x16   : > { %p1395_p0 = pnand %p1394_p13, %p1393_p12 }
  0x18   : > { %p1396_p3 = pneg %p1395_p0 }
  0x1a   : > { %p1401_p7 = pnand %p1399_p5, %p1396_p3 }
  0x1c   : > { %1404 = shalt.err (!%p1401_p7)
}
  0x1d   : > { %s1405_s11 = scalar_lea.vmem %s1601_s25, 16384  ;;  %p1413_p2 = scmp.lt.s32.totalorder %s1601_s25, %s1601_s25 }
  0x1e   : > { %p1406_p9 = scmp.ne.s32.totalorder %s1601_s25, %s1405_s11  ;;  %p1414_p6 = scmp.lt.s32.totalorder %s1405_s11, %s1405_s11 }
  0x20   : > { %p1408_p10 = pnand %p1406_p9, %p1394_p13  ;;  %p1415_p4 = por %p1414_p6, %p1413_p2 }
  0x22   : > { %p1409_p1 = pneg %p1408_p10 }
  0x24   : > { %p1416_p8 = pnand %p1415_p4, %p1409_p1 }
  0x26   : > { %1419 = shalt.err (!%p1416_p8)
}
  0x27   : > { %s1523_s12 = smov 256   ;;  %s1524_s13 = smov 16  }
  0x28   : > { %1327 = dma.hbm_to_vmem [thread:$0]  (!%p1608_p11), %s1886_s3, 16384, %s1601_s25, [#allocation6], %s1523_s12, %s1523_s12, %s1524_s13  }
  0x29   : > { %p26_p1 = scmp.eq.s32.totalorder %s25_s29, 0  ;;  %p35_p2 = scmp.ne.s32.totalorder %s1516_s17, %s1512_s16 }
  0x2a   : > { %p36_p4 = scmp.eq.s32.totalorder %s1520_s18, 0  ;;  %p1337_p6 = scmp.lt.s32.totalorder %s1520_s18, 2 }
  0x2b   : > { %s1647_s24 = scalar_select %p26_p1, %s1516_s17, %s28_s28  }
  0x2c   : > { %p37_p8 = por %p36_p4, %p35_p2  ;;  %p1895_p10 = scmp.eq.s32.totalorder %s1578_s19, 1 }
  0x2d   : > { %s173_s26 = sand.u32 1, %s1516_s17   ;;  %s1125_s5 = sshll.u32 %s1520_s18, 10 }
  0x2e   : > { %p1651_p12 = por %p1895_p10, %p35_p2  ;;  %s1104_s6 = sshll.u32 %s173_s26, 6 }
  0x2f   : > { %s1660_s9 = scalar_lea.hbm %s1883_s0, %s1125_s5  ;;  %s177_s25 = scalar_lea.vmem [#allocation2], %s1104_s6 }
  0x30   : > { %s184_s28 = sshll.u32 %s177_s25, 4  ;;  %p1662_p11 = pnand %p1337_p6, %p37_p8  ;;  %s1666_s28 = int_to_ptr.vmem [resolvable:$true] %s184_s28 }
  0x31   : > { %s1668_s10 = scalar_lea.sflag [#allocation3], %s173_s26  ;;  %s1420_s11 = scalar_lea.hbm %s1660_s9, 1024 }
  0x32   : > { %p1421_p13 = scmp.ne.s32.totalorder %s1660_s9, %s1420_s11  ;;  %p1422_p0 = pneg %p1662_p11 }
  0x33   : > { %s1425_s5 = scalar_lea.hbm %s1883_s0, 2048  ;;  %p1426_p7 = scmp.lt.u32.totalorder %s1660_s9, %s1883_s0 }
  0x34   : > { %p1423_p3 = pnand %p1422_p0, %p1421_p13  ;;  %p1427_p9 = scmp.lt.u32.totalorder %s1425_s5, %s1420_s11 }
  0x35   : > { %p1429_p2 = scmp.lt.u32.totalorder %s1420_s11, %s1660_s9 }
  0x36   : > { %p1424_p5 = pneg %p1423_p3  ;;  %p1428_p1 = por %p1427_p9, %p1426_p7 }
  0x38   : > { %p1430_p4 = por %p1429_p2, %p1428_p1 }
  0x3a   : > { %p1431_p6 = pnand %p1430_p4, %p1424_p5 }
  0x3c   : > { %1434 = shalt.err (!%p1431_p6)
}
  0x3d   : > { %s1435_s26 = scalar_lea.vmem %s1666_s28, 1024  ;;  %s1525_s8 = smov [#allocation2]  }
  0x3e   : > { %p1436_p8 = scmp.ne.s32.totalorder %s1666_s28, %s1435_s26  ;;  %s1440_s25 = sshll.u32 %s1525_s8, 4  ;;  %s1441_s25 = int_to_ptr.vmem [resolvable:$false] %s1440_s25 }
  0x3f   : > { %s1442_s14 = scalar_lea.vmem %s1441_s25, 2048  ;;  %p1443_p3 = scmp.lt.s32.totalorder %s1666_s28, %s1441_s25 }
  0x40   : > { %p1438_p10 = pnand %p1436_p8, %p1422_p0  ;;  %p1444_p7 = scmp.lt.s32.totalorder %s1442_s14, %s1435_s26 }
  0x42   : > { %p1439_p13 = pneg %p1438_p10  ;;  %p1445_p9 = por %p1444_p7, %p1443_p3 }
  0x44   : > { %p1446_p1 = pnand %p1445_p9, %p1439_p13 }
  0x46   : > { %1449 = shalt.err (!%p1446_p1)
}
  0x47   : > { %1331 = dma.hbm_to_vmem [thread:$0]  (!%p1662_p11), %s1660_s9, 1024, %s1666_s28, %s1668_s10, %s1523_s12, %s1523_s12, %s1524_s13  }
  0x48   : > { %p1898_p0 = scmp.ne.s32.totalorder %s1893_s23, 0 }
  0x49   : > { %s1702_s11 = sand.u32 (!%p1898_p0), 1, %s1512_s16   ;;  %p1899_p5 = scmp.ne.s32.totalorder (!%p1898_p0), %s1891_s21, 0 }
  0x4a   : > { %196 = sbr.rel (%p1898_p0) target bundleno = 1107 (0x453), region = 36  ;;  %s1108_s20 = sshll.u32 (!%p1898_p0), %s1702_s11, 6 }
  0x4b   : > { %s199_s5 = scalar_lea.sflag (!%p1898_p0), [#allocation3], %s1702_s11  ;;  %s202_s29 = scalar_lea.vmem (!%p1898_p0), [#allocation2], %s1108_s20 }
  0x51   : > { %1495 = dma.done.wait (%p1899_p5), %s199_s5, 1024  }
  0x52   : > { %1497 = vsyncadd (%p1899_p5), %s199_s5, 4294966272  ;;  %p1900_p11 = scmp.eq.s32.totalorder %s1578_s19, 0 }
  0x54   : > { %1499 = dma.done.wait (%p1900_p11), [#allocation6], 16384   ;;  %p1901_p2 = pmov %p1900_p11 }
  0x55   : > { %v1716_v0 = vld [vmem:[%s202_s29 + $0x20] sm:$0xff]  ;;  %v1718_v1 = vld [vmem:[%s202_s29 + $0x28] sm:$0xff]  ;;  %v1726_v5 = vld [vmem:[%s202_s29 + $0x30] sm:$0xff]  ;;  %v1526_v19 = vmov 0.0|0.0   ;;  %vm1527_vm0 = vmmov 0   ;;  %v1528_v23 = vmov 0.0   ;;  %v276_v24 = vlaneseq }
  0x56   : > { %1501 = vsyncadd (%p1901_p2), [#allocation6], 4294950912  ;;  %v1720_v2 = vld [vmem:[%s202_s29] sm:$0xff]  ;;  %v245_v3 = vadd.f32 %v1718_v1, %v1716_v0  ;;  %v1724_v4 = vld [vmem:[%s202_s29 + $0x8] sm:$0xff]  ;;  %v262_v15 = vmax.f32 %v1716_v0, %v1718_v1  ;;  %1173 = vmatprep.subr.bf16.mxu0 %v1526_v19  ;;  %1179 = vmatprep.subr.bf16.mxu1 %v1526_v19  ;;  %vm287_vm1 = vcmask 130112   ;;  %vm294_vm2 = vcmask 195712  }
  0x57   : > { %v1728_v6 = vld [vmem:[%s202_s29 + $0x38] sm:$0xff]  ;;  %v239_v7 = vadd.f32 %v1724_v4, %v1720_v2  ;;  %v1732_v8 = vld [vmem:[%s202_s29 + $0x10] sm:$0xff]  ;;  %v256_v13 = vmax.f32 %v1720_v2, %v1724_v4  ;;  %v268_v16 = vld [vmem:[%s1884_s1] sm:$0xff]  ;;  %1149 = vmatprep.mubr.msk.f32.mxu0 %vm1527_vm0, %v1528_v23  ;;  %1160 = vmatprep.mubr.msk.f32.mxu1 %vm1527_vm0, %v1528_v23  ;;  %v277_v25 = vand.u32 127, %v276_v24  ;;  %v1762_v26 = vshrl.u32 %v276_v24, 7  ;;  %s1126_s8 = sshll.u32 %s1578_s19, 10 }
  0x58   : > { %v1734_v9 = vld [vmem:[%s202_s29 + $0x18] sm:$0xff]  ;;  %246 = vadd.xlane.f32.xlu1 %v245_v3  ;;  %v248_v10 = vadd.f32 %v1728_v6, %v1726_v5  ;;  %v265_v14 = vmax.f32 %v1726_v5, %v1728_v6  ;;  %v269_v17 = vld [vmem:[%s1884_s1 + $0x8] sm:$0xff]  ;;  %v270_v20 = vld [vmem:[%s1884_s1 + $0x10] sm:$0xff]  ;;  %vm301_vm3 = vcmask 261312   ;;  %vm303_vm4 = vcmask 261120   ;;  %s230_s25 = scalar_lea.vmem [#allocation7], %s1108_s20  ;;  %s1833_s19 = scalar_lea.hbm %s1887_s4, %s1126_s8 }
  0x59   : > { %240 = vadd.xlane.f32.xlu0 %v239_v7  ;;  %v242_v11 = vadd.f32 %v1734_v9, %v1732_v8  ;;  %v259_v12 = vmax.f32 %v1732_v8, %v1734_v9  ;;  %v1174_v18 = vpack.c.bf16 %v269_v17, %v268_v16  ;;  %v271_v21 = vld [vmem:[%s1884_s1 + $0x18] sm:$0xff]  ;;  %v296_v28 = vadd.s32 4294967272, %v277_v25  ;;  %v377_v60 = vld [vmem:[%s1885_s2] sm:$0x3]  ;;  %v699_v17 = vld [vmem:[#allocation5 + $0x10] sm:$0xff]  ;;  %s1017_s14 = sshll.u32 %s230_s25, 4  ;;  %s1835_s14 = int_to_ptr.vmem [resolvable:$true] %s1017_s14 }
  0x5a   : > { %v1177_v22 = vpack.c.bf16 %v271_v21, %v270_v20  ;;  %v282_v29 = vadd.s32 4294967288, %v277_v25  ;;  %v289_v30 = vadd.s32 4294967280, %v277_v25  ;;  %v280_v32 = vsub.s32 %v277_v25, %v1762_v26  ;;  %v697_v16 = vld [vmem:[#allocation5] sm:$0xff]  ;;  %v763_v21 = vld [vmem:[#allocation5 + $0x210] sm:$0xff]  ;;  %v704_v24 = vld [vmem:[#allocation5 + $0x38] sm:$0xff]  ;;  %s1004_s20 = scalar_lea.sflag [#allocation4], %s1702_s11 }
  0x5b   : > { %1175 = vmatpush3.bf16.msra.mxu0 %v1174_v18  ;;  %1181 = vmatpush3.bf16.msra.mxu1 %v1174_v18  ;;  %v299_v34 = vsub.s32 %v296_v28, %v1762_v26  ;;  %vm478_vm5 = vcmask 1041408   ;;  %vm474_vm6 = vcmask 15360   ;;  %v761_v20 = vld [vmem:[#allocation5 + $0x200] sm:$0xff]  ;;  %v766_v25 = vld [vmem:[#allocation5 + $0x228] sm:$0xff]  ;;  %s1450_s21 = scalar_lea.vmem %s1835_s14, 1024  ;;  %s1529_s23 = smov [#allocation7]  }
  0x5c   : > { %249 = vadd.xlane.f32.xlu1 %v248_v10  ;;  %1176 = vmatprep.subr.bf16.mxu0 %v1526_v19  ;;  %v285_v36 = vsub.s32 %v282_v29, %v1762_v26  ;;  %v292_v37 = vsub.s32 %v289_v30, %v1762_v26  ;;  %v701_v30 = vld [vmem:[#allocation5 + $0x20] sm:$0xff]  ;;  %p1451_p4 = scmp.ne.s32.totalorder %s1835_s14, %s1450_s21  ;;  %s1454_s12 = sshll.u32 %s1529_s23, 4  ;;  %s1455_s12 = int_to_ptr.vmem [resolvable:$false] %s1454_s12 }
  0x5d   : > { %243 = vadd.xlane.f32.xlu0 %v242_v11  ;;  %1182 = vmatprep.subr.bf16.mxu1 %v1526_v19  ;;  %v698_v11 = vld [vmem:[#allocation5 + $0x8] sm:$0xff]  ;;  %v1187_v19 = vpack.c.bf16 %v699_v17, %v697_v16  ;;  %v784_v17 = vld [vmem:[#allocation5 + $0x2b8] sm:$0xff]  ;;  %s1456_s13 = scalar_lea.vmem %s1455_s12, 2048  ;;  %p1457_p10 = scmp.lt.s32.totalorder %s1835_s14, %s1455_s12 }
  0x5e   : > { %v782_v16 = vld [vmem:[#allocation5 + $0x2a8] sm:$0xff]  ;;  %p1452_p6 = pnand %p1451_p4, %p1651_p12  ;;  %p1458_p13 = scmp.lt.s32.totalorder %s1456_s13, %s1450_s21 }
  0x5f   : > { %1178 = vmatpush3.bf16.msra.mxu0 %v1177_v22  ;;  %1184 = vmatpush3.bf16.msra.mxu1 %v1177_v22  ;;  %v702_v22 = vld [vmem:[#allocation5 + $0x28] sm:$0xff] }
  0x60   : > { %260 = vmax.xlane.f32.xlu1 %v259_v12  ;;  %1168 = vmatprep.subr.mxu0 %v1528_v23  ;;  %v700_v12 = vld [vmem:[#allocation5 + $0x18] sm:$0xff]  ;;  %v1189_v28 = vpack.c.bf16 %v704_v24, %v702_v22  ;;  %v719_v22 = vld [vmem:[#allocation5 + $0xb0] sm:$0xff]  ;;  %v1269_v24 = vpack.c.bf16 %v784_v17, %v782_v16  ;;  %p1453_p8 = pneg %p1452_p6  ;;  %p1459_p3 = por %p1458_p13, %p1457_p10 }
  0x61   : > { %257 = vmax.xlane.f32.xlu0 %v256_v13  ;;  %1163 = vmatprep.subr.mxu1 %v1528_v23  ;;  %v762_v13 = vld [vmem:[#allocation5 + $0x208] sm:$0xff] }
  0x62   : > { %p1460_p7 = pnand %p1459_p3, %p1453_p8 }
  0x64   : > { %266 = vmax.xlane.f32.xlu1 %v265_v14  ;;  %v1185_v14 = vpack.c.bf16 %v700_v12, %v698_v11  ;;  %v777_v11 = vld [vmem:[#allocation5 + $0x280] sm:$0xff] }
  0x65   : > { %263 = vmax.xlane.f32.xlu0 %v262_v15  ;;  %v764_v15 = vld [vmem:[#allocation5 + $0x218] sm:$0xff] }
  0x66   : > { %v1249_v18 = vpack.c.bf16 %v764_v15, %v762_v13  ;;  %v779_v13 = vld [vmem:[#allocation5 + $0x290] sm:$0xff]  ;;  %v720_v15 = vld [vmem:[#allocation5 + $0xb8] sm:$0xff] }
  0xe5   : > { %v247_v27 = vpop.xlane.xlu1 %246 }
  0xe6   : > { %v241_v31 = vpop.xlane.xlu0 %240  ;;  %v254_v38 = vmul.f32 0.00390625, %v247_v27  ;;  %v768_v27 = vld [vmem:[#allocation5 + $0x238] sm:$0xff] }
  0xe7   : > { %v252_v33 = vmul.f32 0.00390625, %v241_v31  ;;  %v1253_v29 = vpack.c.bf16 %v768_v27, %v766_v25  ;;  %v703_v31 = vld [vmem:[#allocation5 + $0x30] sm:$0xff]  ;;  %v722_v27 = vld [vmem:[#allocation5 + $0xc8] sm:$0xff] }
  0xe8   : > { %v293_v46 = vrot.slane %v254_v38, %v292_v37  ;;  %v783_v25 = vld [vmem:[#allocation5 + $0x2b0] sm:$0xff] }
  0xe9   : > { %v250_v35 = vpop.xlane.xlu1 %249  ;;  %v281_v42 = vrot.slane %v252_v33, %v280_v32  ;;  %v1191_v33 = vpack.c.bf16 %v703_v31, %v701_v30  ;;  %v788_v30 = vld [vmem:[#allocation5 + $0x2d8] sm:$0xff] }
  0xea   : > { %v255_v39 = vmul.f32 0.00390625, %v250_v35  ;;  %v244_v40 = vpop.xlane.xlu0 %243  ;;  %v706_v35 = vld [vmem:[#allocation5 + $0x48] sm:$0xff] }
  0xeb   : > { %v253_v41 = vmul.f32 0.00390625, %v244_v40  ;;  %v772_v40 = vld [vmem:[#allocation5 + $0x258] sm:$0xff] }
  0xec   : > { %v300_v43 = vrot.slane %v255_v39, %v299_v34  ;;  %v770_v39 = vld [vmem:[#allocation5 + $0x248] sm:$0xff] }
  0xed   : > { %v286_v44 = vrot.slane %v253_v41, %v285_v36  ;;  %v261_v45 = vpop.xlane.xlu1 %260  ;;  %v705_v41 = vld [vmem:[#allocation5 + $0x40] sm:$0xff] }
  0xee   : > { %v258_v47 = vpop.xlane.xlu0 %257  ;;  %v389_v49 = vrot.slane %v261_v45, %v285_v36  ;;  %v708_v36 = vld [vmem:[#allocation5 + $0x58] sm:$0xff]  ;;  %v771_v45 = vld [vmem:[#allocation5 + $0x250] sm:$0xff] }
  0xef   : > { %v288_v48 = vsel %vm287_vm1, %v286_v44, %v281_v42  ;;  %v385_v50 = vrot.slane %v258_v47, %v280_v32  ;;  %v765_v32 = vld [vmem:[#allocation5 + $0x220] sm:$0xff]  ;;  %v1193_v38 = vpack.c.bf16 %v708_v36, %v706_v35  ;;  %v1257_v42 = vpack.c.bf16 %v772_v40, %v770_v39  ;;  %v710_v47 = vld [vmem:[#allocation5 + $0x68] sm:$0xff]  ;;  %v723_v35 = vld [vmem:[#allocation5 + $0xd0] sm:$0xff] }
  0xf0   : > { %v295_v51 = vsel %vm294_vm2, %v293_v46, %v288_v48  ;;  %v769_v44 = vld [vmem:[#allocation5 + $0x240] sm:$0xff]  ;;  %v712_v48 = vld [vmem:[#allocation5 + $0x78] sm:$0xff]  ;;  %v726_v39 = vld [vmem:[#allocation5 + $0xe8] sm:$0xff] }
  0xf1   : > { %v302_v52 = vsel %vm301_vm3, %v300_v43, %v295_v51  ;;  %v267_v53 = vpop.xlane.xlu1 %266  ;;  %v390_v57 = vsel %vm287_vm1, %v389_v49, %v385_v50  ;;  %v707_v43 = vld [vmem:[#allocation5 + $0x50] sm:$0xff]  ;;  %v774_v49 = vld [vmem:[#allocation5 + $0x268] sm:$0xff]  ;;  %v1259_v50 = vpack.c.bf16 %v771_v45, %v769_v44  ;;  %v1197_v51 = vpack.c.bf16 %v712_v48, %v710_v47  ;;  %v785_v36 = vld [vmem:[#allocation5 + $0x2c0] sm:$0xff] }
  0xf2   : > { %1150 = vmatmul.mubr.msk.f32.vlgmr.msra.gmra.mrb[0].mxu0 %vm303_vm4, %v302_v52  ;;  %v264_v54 = vpop.xlane.xlu0 %263  ;;  %v399_v55 = vrot.slane %v267_v53, %v299_v34  ;;  %v767_v34 = vld [vmem:[#allocation5 + $0x230] sm:$0xff]  ;;  %v1195_v46 = vpack.c.bf16 %v707_v43, %v705_v41  ;;  %v776_v52 = vld [vmem:[#allocation5 + $0x278] sm:$0xff]  ;;  %v709_v53 = vld [vmem:[#allocation5 + $0x60] sm:$0xff] }
  0xf3   : > { %v394_v56 = vrot.slane %v264_v54, %v292_v37  ;;  %1170 = vmatprep.mubr.msk.f32.mxu0 %vm1527_vm0, %v1528_v23  ;;  %1169 = vmatpush3.msk.msra.mxu0 %vm478_vm5, %v377_v60  ;;  %v1255_v37 = vpack.c.bf16 %v767_v34, %v765_v32  ;;  %v711_v54 = vld [vmem:[#allocation5 + $0x70] sm:$0xff]  ;;  %v721_v34 = vld [vmem:[#allocation5 + $0xc0] sm:$0xff]  ;;  %v728_v40 = vld [vmem:[#allocation5 + $0xf8] sm:$0xff] }
  0xf4   : > { %1186 = vmatprep.subr.bf16.mxu0 %v1185_v14  ;;  %v718_v14 = vld [vmem:[#allocation5 + $0xa8] sm:$0xff]  ;;  %v1211_v43 = vpack.c.bf16 %v723_v35, %v721_v34  ;;  %v1213_v45 = vpack.c.bf16 %v728_v40, %v726_v39  ;;  %v727_v47 = vld [vmem:[#allocation5 + $0xf0] sm:$0xff]  ;;  %v789_v48 = vld [vmem:[#allocation5 + $0x2e0] sm:$0xff] }
  0xf5   : > { %v395_v58 = vsel %vm294_vm2, %v394_v56, %v390_v57  ;;  %v773_v56 = vld [vmem:[#allocation5 + $0x260] sm:$0xff]  ;;  %v775_v57 = vld [vmem:[#allocation5 + $0x270] sm:$0xff]  ;;  %v790_v41 = vld [vmem:[#allocation5 + $0x2e8] sm:$0xff] }
  0xf6   : > { %v400_v59 = vsel %vm301_vm3, %v399_v55, %v395_v58  ;;  %v1261_v55 = vpack.c.bf16 %v776_v52, %v774_v49  ;;  %v714_v58 = vld [vmem:[#allocation5 + $0x88] sm:$0xff]  ;;  %v732_v52 = vld [vmem:[#allocation5 + $0x118] sm:$0xff]  ;;  %v737_v35 = vld [vmem:[#allocation5 + $0x140] sm:$0xff] }
  0xf7   : > { %1161 = vmatmul.mubr.msk.f32.vlgmr.msra.gmra.mrb[0].mxu1 %vm303_vm4, %v400_v59  ;;  %v716_v59 = vld [vmem:[#allocation5 + $0x98] sm:$0xff]  ;;  %v801_v39 = vld [vmem:[#allocation5 + $0x340] sm:$0xff]  ;;  %v803_v40 = vld [vmem:[#allocation5 + $0x350] sm:$0xff] }
  0xf8   : > { %1165 = vmatprep.mubr.msk.f32.mxu1 %vm1527_vm0, %v1528_v23  ;;  %1164 = vmatpush3.msk.msra.mxu1 %vm478_vm5, %v377_v60  ;;  %v1251_v23 = vpack.c.bf16 %v763_v21, %v761_v20  ;;  %v778_v60 = vld [vmem:[#allocation5 + $0x288] sm:$0xff]  ;;  %v1205_v20 = vpack.c.bf16 %v720_v15, %v718_v14  ;;  %v717_v21 = vld [vmem:[#allocation5 + $0xa0] sm:$0xff]  ;;  %v804_v34 = vld [vmem:[#allocation5 + $0x358] sm:$0xff] }
  0xf9   : > { %1250 = vmatprep.subr.bf16.mxu1 %v1249_v18  ;;  %v1207_v31 = vpack.c.bf16 %v719_v22, %v717_v21  ;;  %v733_v22 = vld [vmem:[#allocation5 + $0x120] sm:$0xff] }
 0x1c5   : > { %v372_v61 = vpop.f32.mrb[0].mxu0 }
 0x1c6   : > { %v376_v62 = vmax.f32 %v372_v61, 0.0  ;;  %v1151_v63 = vpop.f32.mrb[1].mxu0  ;;  %v780_v61 = vld [vmem:[#allocation5 + $0x298] sm:$0xff] }
 0x1c7   : > { %v1263_v63 = vpack.c.bf16 %v775_v57, %v773_v56  ;;  %v1265_v12 = vpack.c.bf16 %v780_v61, %v778_v60  ;;  %v793_v60 = vld [vmem:[#allocation5 + $0x300] sm:$0xff] }
 0x1c8   : > { %1171 = vmatmul.mubr.msk.f32.vlgmr.msra.gmra.mrb[2].mxu0 %vm474_vm6, %v376_v62  ;;  %v1199_v62 = vpack.c.bf16 %v711_v54, %v709_v53  ;;  %v794_v53 = vld [vmem:[#allocation5 + $0x308] sm:$0xff]  ;;  %v796_v54 = vld [vmem:[#allocation5 + $0x318] sm:$0xff] }
 0x1c9   : > { %1188 = vmatpush1.bf16.msra.mxu0 %v1187_v19  ;;  %v1267_v19 = vpack.c.bf16 %v779_v13, %v777_v11  ;;  %v1281_v61 = vpack.c.bf16 %v796_v54, %v794_v53  ;;  %v1778_v53 = vsub.s32 0, %v1762_v26 }
 0x1ca   : > { %v469_v3 = vpop.f32.mrb[0].mxu1  ;;  %1190 = vmatprep.subr.bf16.mxu0 %v1189_v28  ;;  %v724_v28 = vld [vmem:[#allocation5 + $0xd8] sm:$0xff] }
 0x1cb   : > { %v473_v7 = vmax.f32 %v469_v3, 0.0  ;;  %v1162_v10 = vpop.f32.mrb[1].mxu1  ;;  %v1201_v3 = vpack.c.bf16 %v716_v59, %v714_v58  ;;  %v729_v58 = vld [vmem:[#allocation5 + $0x100] sm:$0xff]  ;;  %v731_v59 = vld [vmem:[#allocation5 + $0x110] sm:$0xff] }
 0x1cc   : > { %v715_v10 = vld [vmem:[#allocation5 + $0x90] sm:$0xff]  ;;  %v1219_v11 = vpack.c.bf16 %v731_v59, %v729_v58  ;;  %v812_v59 = vld [vmem:[#allocation5 + $0x398] sm:$0xff] }
 0x1cd   : > { %1166 = vmatmul.mubr.msk.f32.vlgmr.msra.gmra.mrb[2].mxu1 %vm474_vm6, %v473_v7  ;;  %1192 = vmatpush1.bf16.msra.mxu0 %v1191_v33  ;;  %v713_v7 = vld [vmem:[#allocation5 + $0x80] sm:$0xff]  ;;  %v1209_v33 = vpack.c.bf16 %v724_v28, %v722_v27  ;;  %v799_v28 = vld [vmem:[#allocation5 + $0x330] sm:$0xff] }
 0x1ce   : > { %1252 = vmatpush1.bf16.msra.mxu1 %v1251_v23  ;;  %1194 = vmatprep.subr.bf16.mxu0 %v1193_v38  ;;  %v1203_v18 = vpack.c.bf16 %v715_v10, %v713_v7  ;;  %v781_v23 = vld [vmem:[#allocation5 + $0x2a0] sm:$0xff]  ;;  %v787_v38 = vld [vmem:[#allocation5 + $0x2d0] sm:$0xff]  ;;  %v798_v7 = vld [vmem:[#allocation5 + $0x328] sm:$0xff] }
 0x1cf   : > { %1254 = vmatprep.subr.bf16.mxu1 %v1253_v29  ;;  %v786_v29 = vld [vmem:[#allocation5 + $0x2c8] sm:$0xff]  ;;  %v1271_v32 = vpack.c.bf16 %v783_v25, %v781_v23  ;;  %v1275_v44 = vpack.c.bf16 %v787_v38, %v785_v36  ;;  %v800_v10 = vld [vmem:[#allocation5 + $0x338] sm:$0xff]  ;;  %v735_v23 = vld [vmem:[#allocation5 + $0x130] sm:$0xff] }
 0x1d0   : > { %v1285_v14 = vpack.c.bf16 %v800_v10, %v798_v7  ;;  %v1223_v27 = vpack.c.bf16 %v735_v23, %v733_v22  ;;  %v739_v36 = vld [vmem:[#allocation5 + $0x150] sm:$0xff]  ;;  %v809_v7 = vld [vmem:[#allocation5 + $0x380] sm:$0xff] }
 0x1d1   : > { %1196 = vmatpush1.bf16.msra.mxu0 %v1195_v46  ;;  %v725_v46 = vld [vmem:[#allocation5 + $0xe0] sm:$0xff]  ;;  %v1227_v38 = vpack.c.bf16 %v739_v36, %v737_v35  ;;  %v811_v10 = vld [vmem:[#allocation5 + $0x390] sm:$0xff]  ;;  %v758_v36 = vld [vmem:[#allocation5 + $0x1e8] sm:$0xff] }
 0x1d2   : > { %1256 = vmatpush1.bf16.msra.mxu1 %v1255_v37  ;;  %1198 = vmatprep.subr.bf16.mxu0 %v1197_v51  ;;  %v1273_v37 = vpack.c.bf16 %v788_v30, %v786_v29  ;;  %v730_v51 = vld [vmem:[#allocation5 + $0x108] sm:$0xff]  ;;  %v815_v22 = vld [vmem:[#allocation5 + $0x3b0] sm:$0xff] }
 0x1d3   : > { %1258 = vmatprep.subr.bf16.mxu1 %v1257_v42  ;;  %v792_v42 = vld [vmem:[#allocation5 + $0x2f8] sm:$0xff]  ;;  %v1217_v57 = vpack.c.bf16 %v732_v52, %v730_v51  ;;  %v738_v30 = vld [vmem:[#allocation5 + $0x148] sm:$0xff]  ;;  %v805_v51 = vld [vmem:[#allocation5 + $0x360] sm:$0xff] }
 0x1d4   : > { %v1277_v49 = vpack.c.bf16 %v792_v42, %v790_v41  ;;  %v1291_v41 = vpack.c.bf16 %v803_v40, %v801_v39  ;;  %v742_v42 = vld [vmem:[#allocation5 + $0x168] sm:$0xff]  ;;  %v807_v52 = vld [vmem:[#allocation5 + $0x370] sm:$0xff]  ;;  %v824_v40 = vld [vmem:[#allocation5 + $0x3f8] sm:$0xff] }
 0x1d5   : > { %1200 = vmatpush1.bf16.msra.mxu0 %v1199_v62  ;;  %v795_v62 = vld [vmem:[#allocation5 + $0x310] sm:$0xff]  ;;  %v1295_v54 = vpack.c.bf16 %v807_v52, %v805_v51  ;;  %v822_v39 = vld [vmem:[#allocation5 + $0x3e8] sm:$0xff] }
 0x1d6   : > { %1260 = vmatpush1.bf16.msra.mxu1 %v1259_v50  ;;  %1202 = vmatprep.subr.bf16.mxu0 %v1201_v3  ;;  %v791_v50 = vld [vmem:[#allocation5 + $0x2f0] sm:$0xff]  ;;  %v736_v3 = vld [vmem:[#allocation5 + $0x138] sm:$0xff] }
 0x1d7   : > { %1262 = vmatprep.subr.bf16.mxu1 %v1261_v55  ;;  %v1215_v55 = vpack.c.bf16 %v727_v47, %v725_v46  ;;  %v1279_v56 = vpack.c.bf16 %v791_v50, %v789_v48  ;;  %v808_v46 = vld [vmem:[#allocation5 + $0x378] sm:$0xff]  ;;  %v741_v47 = vld [vmem:[#allocation5 + $0x160] sm:$0xff]  ;;  %v743_v48 = vld [vmem:[#allocation5 + $0x170] sm:$0xff] }
 0x1d8   : > { %v1231_v50 = vpack.c.bf16 %v743_v48, %v741_v47  ;;  %v819_v35 = vld [vmem:[#allocation5 + $0x3d0] sm:$0xff] }
 0x1d9   : > { %1204 = vmatpush1.bf16.msra.mxu0 %v1203_v18  ;;  %v823_v47 = vld [vmem:[#allocation5 + $0x3f0] sm:$0xff] }
 0x1da   : > { %1264 = vmatpush1.bf16.msra.mxu1 %v1263_v63  ;;  %1206 = vmatprep.subr.bf16.mxu0 %v1205_v20  ;;  %v734_v63 = vld [vmem:[#allocation5 + $0x128] sm:$0xff] }
 0x1db   : > { %1266 = vmatprep.subr.bf16.mxu1 %v1265_v12  ;;  %v1283_v12 = vpack.c.bf16 %v795_v62, %v793_v60  ;;  %v1221_v13 = vpack.c.bf16 %v736_v3, %v734_v63  ;;  %v745_v60 = vld [vmem:[#allocation5 + $0x180] sm:$0xff] }
 0x1dd   : > { %1208 = vmatpush1.bf16.msra.mxu0 %v1207_v31  ;;  %v740_v31 = vld [vmem:[#allocation5 + $0x158] sm:$0xff] }
 0x1de   : > { %1268 = vmatpush1.bf16.msra.mxu1 %v1267_v19  ;;  %1210 = vmatprep.subr.bf16.mxu0 %v1209_v33  ;;  %v1225_v33 = vpack.c.bf16 %v740_v31, %v738_v30  ;;  %v753_v30 = vld [vmem:[#allocation5 + $0x1c0] sm:$0xff]  ;;  %v755_v31 = vld [vmem:[#allocation5 + $0x1d0] sm:$0xff] }
 0x1df   : > { %1270 = vmatprep.subr.bf16.mxu1 %v1269_v24  ;;  %v797_v24 = vld [vmem:[#allocation5 + $0x320] sm:$0xff] }
 0x1e0   : > { %v1287_v29 = vpack.c.bf16 %v799_v28, %v797_v24  ;;  %v754_v24 = vld [vmem:[#allocation5 + $0x1c8] sm:$0xff] }
 0x1e1   : > { %1212 = vmatpush1.bf16.msra.mxu0 %v1211_v43  ;;  %v744_v43 = vld [vmem:[#allocation5 + $0x178] sm:$0xff] }
 0x1e2   : > { %1272 = vmatpush1.bf16.msra.mxu1 %v1271_v32  ;;  %1214 = vmatprep.subr.bf16.mxu0 %v1213_v45  ;;  %v802_v32 = vld [vmem:[#allocation5 + $0x348] sm:$0xff]  ;;  %v1229_v45 = vpack.c.bf16 %v744_v43, %v742_v42  ;;  %v1309_v42 = vpack.c.bf16 %v824_v40, %v822_v39  ;;  %v757_v43 = vld [vmem:[#allocation5 + $0x1e0] sm:$0xff] }
 0x1e3   : > { %1274 = vmatprep.subr.bf16.mxu1 %v1273_v37  ;;  %v1289_v37 = vpack.c.bf16 %v804_v34, %v802_v32  ;;  %v817_v34 = vld [vmem:[#allocation5 + $0x3c0] sm:$0xff] }
 0x1e5   : > { %1216 = vmatpush1.bf16.msra.mxu0 %v1215_v55  ;;  %v746_v55 = vld [vmem:[#allocation5 + $0x188] sm:$0xff] }
 0x1e6   : > { %1276 = vmatpush1.bf16.msra.mxu1 %v1275_v44  ;;  %1218 = vmatprep.subr.bf16.mxu0 %v1217_v57  ;;  %v806_v44 = vld [vmem:[#allocation5 + $0x368] sm:$0xff] }
 0x1e7   : > { %1278 = vmatprep.subr.bf16.mxu1 %v1277_v49  ;;  %v1293_v49 = vpack.c.bf16 %v808_v46, %v806_v44  ;;  %v810_v57 = vld [vmem:[#allocation5 + $0x388] sm:$0xff]  ;;  %v759_v44 = vld [vmem:[#allocation5 + $0x1f0] sm:$0xff] }
 0x1e8   : > { %v1297_v63 = vpack.c.bf16 %v812_v59, %v810_v57  ;;  %v1247_v46 = vpack.c.bf16 %v759_v44, %v757_v43 }
 0x1e9   : > { %1220 = vmatpush1.bf16.msra.mxu0 %v1219_v11  ;;  %v1299_v11 = vpack.c.bf16 %v811_v10, %v809_v7 }
 0x1ea   : > { %1280 = vmatpush1.bf16.msra.mxu1 %v1279_v56  ;;  %1222 = vmatprep.subr.bf16.mxu0 %v1221_v13  ;;  %v748_v56 = vld [vmem:[#allocation5 + $0x198] sm:$0xff] }
 0x1eb   : > { %1282 = vmatprep.subr.bf16.mxu1 %v1281_v61  ;;  %v1233_v58 = vpack.c.bf16 %v748_v56, %v746_v55  ;;  %v747_v61 = vld [vmem:[#allocation5 + $0x190] sm:$0xff]  ;;  %v752_v13 = vld [vmem:[#allocation5 + $0x1b8] sm:$0xff] }
 0x1ec   : > { %v1235_v3 = vpack.c.bf16 %v747_v61, %v745_v60 }
 0x1ed   : > { %1224 = vmatpush1.bf16.msra.mxu0 %v1223_v27  ;;  %v818_v27 = vld [vmem:[#allocation5 + $0x3c8] sm:$0xff] }
 0x1ee   : > { %1284 = vmatpush1.bf16.msra.mxu1 %v1283_v12  ;;  %1226 = vmatprep.subr.bf16.mxu0 %v1225_v33  ;;  %v750_v12 = vld [vmem:[#allocation5 + $0x1a8] sm:$0xff]  ;;  %v1243_v33 = vpack.c.bf16 %v755_v31, %v753_v30 }
 0x1ef   : > { %1286 = vmatprep.subr.bf16.mxu1 %v1285_v14  ;;  %v814_v14 = vld [vmem:[#allocation5 + $0x3a8] sm:$0xff] }
 0x1f1   : > { %1228 = vmatpush1.bf16.msra.mxu0 %v1227_v38  ;;  %v760_v38 = vld [vmem:[#allocation5 + $0x1f8] sm:$0xff] }
 0x1f2   : > { %1288 = vmatpush1.bf16.msra.mxu1 %v1287_v29  ;;  %1230 = vmatprep.subr.bf16.mxu0 %v1229_v45  ;;  %v820_v29 = vld [vmem:[#allocation5 + $0x3d8] sm:$0xff]  ;;  %v821_v45 = vld [vmem:[#allocation5 + $0x3e0] sm:$0xff] }
 0x1f3   : > { %1290 = vmatprep.subr.bf16.mxu1 %v1289_v37  ;;  %v1305_v32 = vpack.c.bf16 %v820_v29, %v818_v27  ;;  %v1307_v37 = vpack.c.bf16 %v819_v35, %v817_v34  ;;  %v1311_v48 = vpack.c.bf16 %v823_v47, %v821_v45 }
 0x1f5   : > { %1232 = vmatpush1.bf16.msra.mxu0 %v1231_v50 }
 0x1f6   : > { %1292 = vmatpush1.bf16.msra.mxu1 %v1291_v41  ;;  %1234 = vmatprep.subr.bf16.mxu0 %v1233_v58  ;;  %v1245_v41 = vpack.c.bf16 %v760_v38, %v758_v36 }
 0x1f7   : > { %1294 = vmatprep.subr.bf16.mxu1 %v1293_v49 }
 0x1f9   : > { %1236 = vmatpush1.bf16.msra.mxu0 %v1235_v3 }
 0x1fa   : > { %1296 = vmatpush1.bf16.msra.mxu1 %v1295_v54 }
 0x1fb   : > { %1298 = vmatprep.subr.bf16.mxu1 %v1297_v63 }
 0x1fe   : > { %1300 = vmatpush1.bf16.msra.mxu1 %v1299_v11 }
 0x29b   : > { %v621_v15 = vpop.f32.mrb[2].mxu0 }
 0x29c   : > { %v1172_v16 = vpop.f32.mrb[3].mxu0 }
 0x29d   : > { %v816_v16 = vld [vmem:[#allocation5 + $0x3b8] sm:$0xff] }
 0x2a0   : > { %v548_v17 = vpop.f32.mrb[2].mxu1 }
 0x2a1   : > { %v622_v18 = vadd.f32 %v621_v15, %v548_v17  ;;  %v1167_v19 = vpop.f32.mrb[3].mxu1  ;;  %v1237_v15 = vpack.c.bf16 %v752_v13, %v750_v12  ;;  %v749_v17 = vld [vmem:[#allocation5 + $0x1a0] sm:$0xff] }
 0x2a2   : > { %v1301_v19 = vpack.c.bf16 %v816_v16, %v814_v14 }
 0x2a3   : > { %v1117_v20 = vmul.f32 -1.442695, %v622_v18  ;;  %v751_v18 = vld [vmem:[#allocation5 + $0x1b0] sm:$0xff]  ;;  %1238 = vmatprep.subr.bf16.mxu0 %v1237_v15 }
 0x2a4   : > { %1302 = vmatprep.subr.bf16.mxu1 %v1301_v19 }
 0x2a5   : > { %1380 = vpow2.f32 %v1117_v20  ;;  %v1239_v20 = vpack.c.bf16 %v751_v18, %v749_v17 }
 0x2a7   : > { %1240 = vmatpush1.bf16.msra.mxu0 %v1239_v20 }
 0x2af   : > { %v1381_v21 = vpop.eup %1380 }
 0x2b0   : > { %v628_v25 = vadd.f32 1.0, %v1381_v21  ;;  %v813_v21 = vld [vmem:[#allocation5 + $0x3a0] sm:$0xff] }
 0x2b1   : > { %v1303_v23 = vpack.c.bf16 %v815_v22, %v813_v21 }
 0x2b2   : > { %1382 = vrcp.f32 %v628_v25  ;;  %v756_v25 = vld [vmem:[#allocation5 + $0x1d8] sm:$0xff] }
 0x2b3   : > { %v1241_v28 = vpack.c.bf16 %v756_v25, %v754_v24  ;;  %1304 = vmatpush1.bf16.msra.mxu1 %v1303_v23 }
 0x2b4   : > { %1306 = vmatprep.subr.bf16.mxu1 %v1305_v32 }
 0x2b5   : > { %1242 = vmatprep.subr.bf16.mxu0 %v1241_v28 }
 0x2b6   : > { %1244 = vmatpush1.bf16.msra.mxu0 %v1243_v33 }
 0x2b7   : > { %1308 = vmatpush1.bf16.msra.mxu1 %v1307_v37  ;;  %1246 = vmatprep.subr.bf16.mxu0 %v1245_v41 }
 0x2b8   : > { %1310 = vmatprep.subr.bf16.mxu1 %v1309_v42 }
 0x2ba   : > { %1248 = vmatpush1.bf16.msra.mxu0 %v1247_v46 }
 0x2bb   : > { %1312 = vmatpush1.bf16.msra.mxu1 %v1311_v48 }
 0x2bc   : > { %v1383_v62 = vpop.eup %1382 }
 0x2bd   : > { %v634_v26 = vrot.slane %v1383_v62, %v1778_v53 }
 0x2bf   : > { %640 = vbcast.lane.b32.xlu1 %v634_v26, 264  ;;  %636 = vbcast.lane.b32.xlu0 %v634_v26, 256 }
 0x2c3   : > { %644 = vbcast.lane.b32.xlu1 %v634_v26, 272 }
 0x2c7   : > { %648 = vbcast.lane.b32.xlu1 %v634_v26, 280 }
 0x331   : > { %v641_v49 = vpop.permute.xlu1 %640  ;;  %v637_v50 = vpop.permute.xlu0 %636 }
 0x332   : > { %v1782_v51 = vmul.f32 %v641_v49, %v1732_v8  ;;  %v1785_v52 = vmul.f32 %v641_v49, %v1734_v9  ;;  %v1788_v54 = vmul.f32 %v637_v50, %v1720_v2  ;;  %v1791_v55 = vmul.f32 %v637_v50, %v1724_v4 }
 0x334   : > { %v658_v8 = vadd.f32 %v1782_v51, %v1788_v54  ;;  %v667_v9 = vadd.f32 %v1785_v52, %v1791_v55 }
 0x335   : > { %v645_v56 = vpop.permute.xlu1 %644 }
 0x336   : > { %v1794_v57 = vmul.f32 %v645_v56, %v1716_v0  ;;  %v1797_v58 = vmul.f32 %v645_v56, %v1718_v1 }
 0x338   : > { %v659_v2 = vadd.f32 %v658_v8, %v1794_v57  ;;  %v668_v60 = vadd.f32 %v667_v9, %v1797_v58  ;;  %v679_v1 = vmax.f32 %v1788_v54, %v1794_v57  ;;  %v688_v61 = vmax.f32 %v1791_v55, %v1797_v58 }
 0x339   : > { %v649_v59 = vpop.permute.xlu1 %648 }
 0x33a   : > { %v1806_v4 = vmul.f32 %v649_v59, %v1726_v5  ;;  %v1809_v0 = vmul.f32 %v649_v59, %v1728_v6 }
 0x33c   : > { %v660_v62 = vadd.f32 %v659_v2, %v1806_v4  ;;  %v669_v63 = vadd.f32 %v668_v60, %v1809_v0  ;;  %v680_v3 = vmax.f32 %v1782_v51, %v1806_v4  ;;  %v689_v5 = vmax.f32 %v1785_v52, %v1809_v0 }
 0x33e   : > { %v661_v7 = vrot.slane %v660_v62, 4  ;;  %v670_v10 = vrot.slane %v669_v63, 4  ;;  %v681_v6 = vmax.f32 %v679_v1, %v680_v3  ;;  %v690_v26 = vmax.f32 %v688_v61, %v689_v5 }
 0x340   : > { %v662_v11 = vadd.f32 %v661_v7, %v660_v62  ;;  %v671_v12 = vadd.f32 %v670_v10, %v669_v63  ;;  %v682_v13 = vrot.slane %v681_v6, 4  ;;  %v691_v14 = vrot.slane %v690_v26, 4 }
 0x342   : > { %v663_v15 = vrot.slane %v662_v11, 2  ;;  %v683_v16 = vmax.f32 %v681_v6, %v682_v13  ;;  %v672_v17 = vrot.slane %v671_v12, 2  ;;  %v692_v18 = vmax.f32 %v690_v26, %v691_v14 }
 0x344   : > { %v664_v19 = vadd.f32 %v663_v15, %v662_v11  ;;  %v684_v20 = vrot.slane %v683_v16, 2  ;;  %v673_v21 = vadd.f32 %v672_v17, %v671_v12  ;;  %v693_v22 = vrot.slane %v692_v18, 2 }
 0x346   : > { %v674_v23 = vrot.slane %v673_v21, 1  ;;  %v694_v24 = vmax.f32 %v692_v18, %v693_v22  ;;  %v665_v25 = vrot.slane %v664_v19, 1  ;;  %v685_v27 = vmax.f32 %v683_v16, %v684_v20 }
 0x348   : > { %v675_v28 = vadd.f32 %v674_v23, %v673_v21  ;;  %v695_v29 = vrot.slane %v694_v24, 1  ;;  %v666_v30 = vadd.f32 %v665_v25, %v664_v19  ;;  %v686_v31 = vrot.slane %v685_v27, 1 }
 0x34a   : > { %v678_v32 = vmul.f32 0.03125, %v675_v28  ;;  %v696_v33 = vmax.f32 %v694_v24, %v695_v29  ;;  %v677_v34 = vmul.f32 0.03125, %v666_v30  ;;  %v687_v35 = vmax.f32 %v685_v27, %v686_v31 }
 0x34c   : > { %889 = vmatprep.mubr.f32.mxu0 %v678_v32  ;;  %960 = vmatprep.mubr.f32.mxu1 %v696_v33 }
 0x34d   : > { %890 = vmatmul.mubr.f32.vlgmr.msra.gmra.mrb[4].mxu0 %v677_v34  ;;  %961 = vmatmul.mubr.f32.vlgmr.msra.gmra.mrb[4].mxu1 %v687_v35 }
 0x420   : > { %v891_v36 = vpop.f32.mrb[4].mxu0  ;;  %v962_v37 = vpop.f32.mrb[4].mxu1 }
 0x421   : > { %v963_v38 = vadd.f32 %v962_v37, %v891_v36  ;;  %v893_v39 = vpop.f32.mrb[5].mxu0  ;;  %v964_v40 = vpop.f32.mrb[5].mxu1 }
 0x422   : > { %v965_v41 = vadd.f32 %v964_v40, %v893_v39 }
 0x423   : > { %v1118_v42 = vmul.f32 -1.442695, %v963_v38 }
 0x424   : > { %v1119_v43 = vmul.f32 -1.442695, %v965_v41 }
 0x425   : > { %1384 = vpow2.f32 %v1118_v42 }
 0x426   : > { %1386 = vpow2.f32 %v1119_v43 }
 0x42f   : > { %v1385_v44 = vpop.eup %1384 }
 0x430   : > { %v1387_v45 = vpop.eup %1386  ;;  %v973_v46 = vadd.f32 1.0, %v1385_v44 }
 0x431   : > { %v974_v47 = vadd.f32 1.0, %v1387_v45 }
 0x432   : > { %1388 = vrcp.f32 %v973_v46 }
 0x433   : > { %1390 = vrcp.f32 %v974_v47 }
 0x43c   : > { %v1389_v48 = vpop.eup %1388 }
 0x43d   : > { %v1391_v49 = vpop.eup %1390  ;;  %v982_v50 = vrot.slane %v1389_v48, %v1778_v53 }
 0x43e   : > { %v986_v56 = vrot.slane %v1391_v49, %v1778_v53 }
 0x43f   : > { %v987_v8 = vmul.f32 %v982_v50, %v1788_v54  ;;  %v989_v9 = vmul.f32 %v982_v50, %v1782_v51  ;;  %v991_v59 = vmul.f32 %v982_v50, %v1794_v57  ;;  %v993_v2 = vmul.f32 %v982_v50, %v1806_v4 }
 0x440   : > { %v988_v53 = vmul.f32 %v986_v56, %v1791_v55  ;;  %v990_v54 = vmul.f32 %v986_v56, %v1785_v52  ;;  %v992_v51 = vmul.f32 %v986_v56, %v1797_v58  ;;  %v994_v57 = vmul.f32 %v986_v56, %v1809_v0 }
 0x441   : > { %995 = vst [vmem:[%s230_s25] sm:$0xff] %v987_v8  ;;  %997 = vst [vmem:[%s230_s25 + $0x10] sm:$0xff] %v989_v9 }
 0x442   : > { %999 = vst [vmem:[%s230_s25 + $0x20] sm:$0xff] %v991_v59  ;;  %1001 = vst [vmem:[%s230_s25 + $0x30] sm:$0xff] %v993_v2 }
 0x443   : > { %996 = vst [vmem:[%s230_s25 + $0x8] sm:$0xff] %v988_v53  ;;  %998 = vst [vmem:[%s230_s25 + $0x18] sm:$0xff] %v990_v54 }
 0x444   : > { %1000 = vst [vmem:[%s230_s25 + $0x28] sm:$0xff] %v992_v51  ;;  %1002 = vst [vmem:[%s230_s25 + $0x38] sm:$0xff] %v994_v57 }
 0x445   : > { %1463 = shalt.err (!%p1460_p7)
}
 0x446   : > { %s1464_s9 = scalar_lea.hbm %s1833_s19, 1024  ;;  %s1468_s6 = scalar_lea.hbm %s1887_s4, 2048 }
 0x447   : > { %p1465_p9 = scmp.ne.s32.totalorder %s1833_s19, %s1464_s9  ;;  %p1469_p5 = scmp.lt.u32.totalorder %s1833_s19, %s1887_s4 }
 0x448   : > { %p1470_p11 = scmp.lt.u32.totalorder %s1468_s6, %s1464_s9  ;;  %p1472_p4 = scmp.lt.u32.totalorder %s1464_s9, %s1833_s19 }
 0x449   : > { %p1466_p1 = pnand %p1465_p9, %p1651_p12 }
 0x44a   : > { %p1471_p2 = por %p1470_p11, %p1469_p5 }
 0x44b   : > { %p1467_p0 = pneg %p1466_p1 }
 0x44c   : > { %p1473_p6 = por %p1472_p4, %p1471_p2 }
 0x44e   : > { %p1474_p8 = pnand %p1473_p6, %p1467_p0 }
 0x450   : > { %1477 = shalt.err (!%p1474_p8)
}
 0x451   : > { %s1530_s8 = smov 256   ;;  %s1531_s25 = smov 16  }
 0x452   : > { %1322 = dma.vmem_to_hbm [thread:$0]  (%p1651_p12), %s1835_s14, 1024, %s1833_s19, %s1004_s20, %s1530_s8, %s1530_s8, %s1531_s25  }
 0x453 PF: > { %s1032_s5 = sand.u32 1, %s1508_s15   ;;  %p1902_p10 = scmp.ne.s32.totalorder %s1892_s22, 0 }
 0x454   : > { %p1903_p13 = scmp.ge.s32.totalorder %s1520_s18, 2  ;;  %s1033_s29 = scalar_lea.sflag [#allocation4], %s1032_s5 }
 0x456   : > { %p1333_p3 = pnand %p1903_p13, %p1902_p10 }
 0x458   : > { %1503 = dma.done.wait (!%p1333_p3), %s1033_s29, 1024  }
 0x459   : > { %1505 = vsyncadd (!%p1333_p3), %s1033_s29, 4294966272  ;;  %p18_p7 = scmp.ge.s32.totalorder %s1613_s27, 4   ;;  %s1904_s15 = smov %s1512_s16 }
 0x45a   : > { %s1905_s16 = smov %s1516_s17  ;;  %s1906_s17 = smov %s1647_s24 }
 0x45b   : > { %s1907_s18 = smov %s1613_s27  ;;  %20 = sbr.rel (!%p18_p7) target bundleno = 6 (0x6), region = 85 }
 0x462   :  { %1038 = vsyncpa [#allocation3], 1 }
 0x463   :  { %1040 = vsyncpa [#allocation3 + $0x1], 1 }
 0x464   :  { %1041 = vsyncpa [#allocation6], 1 }
 0x465   :  { %1042 = vsyncpa [#allocation4], 1 }
 0x466   :  { %1044 = vsyncpa [#allocation4 + $0x1], 1 }

</bundles_post_ra>
